<compile_context>
chip_gen: v7x
topology: tpu7x:2x2x1
jax: 0.10.0
libtpu: 0.0.40
codegen_flags: <defaults>
</compile_context>

<pallas_src>
import functools

import numpy as np
import jax
import jax.numpy as jnp
from jax import lax
from jax.experimental import pallas as pl
from jax.experimental.pallas import tpu as pltpu


def _round_up(x, m):
    return (x + m - 1) // m * m


def _cdiv(a, b):
    return (a + b - 1) // b


def _has_bf16_vector_units():
    """bf16 VPU/EUP exist on v6e and later; v5e and older do not."""
    try:
        kind = jax.devices()[0].device_kind.lower()
    except Exception:
        return False
    return "tpu" in kind and not any(t in kind for t in ("v2", "v3", "v4", "v5"))


def eeg_project_kernel(x_ref, w1_ref, w2_ref, c_ref, o_ref, *, z_dim, bf16_elementwise):
    # x tile: (TB, input_dim); W1/W2 are bf16, lane-padded to z_pad and VMEM-resident.
    # c_ref packs rows [b1, b2, gamma, beta, 0, 0, 0, 0] as one (8, z_pad) f32 block.
    c = c_ref[...]
    b1, b2, gamma, beta = c[0:1], c[1:2], c[2:3], c[3:4]

    # Linear 1 on the MXU: bf16 operands, f32 accumulation. astype is a no-op if the
    # caller already supplies bf16 activations (saves input-side HBM bandwidth).
    h = jnp.dot(x_ref[...].astype(jnp.bfloat16), w1_ref[...],
                preferred_element_type=jnp.float32) + b1

    # Residual branch. Tanh GELU keeps the transcendental on the EUP slot instead of a
    # long erf polynomial on the saturating VALU slot.
    # TODO(synk): torch nn.GELU defaults to the erf form; tanh approx differs by <~3e-3.
    if bf16_elementwise:
        g = jax.nn.gelu(h.astype(jnp.bfloat16), approximate=True)   # bf16 VPU/EUP (v6e/v7x)
    else:
        g = jax.nn.gelu(h, approximate=True).astype(jnp.bfloat16)   # f32 path (v5e & older)
    h2 = jnp.dot(g, w2_ref[...], preferred_element_type=jnp.float32) + b2
    # TODO(synk): nn.Dropout(drop_proj) is identity in eval mode; train-mode RNG masking not implemented.
    r = h + h2                                                       # ResidualAdd (f32)

    # LayerNorm over the z_dim valid lanes. Padded lanes of r are exactly 0 (zero-padded
    # W/b and gelu(0)==0), so full-lane sums equal valid-lane sums and no per-lane mask
    # is needed when using var = E[r^2] - mean^2.
    inv_n = 1.0 / z_dim
    mean = jnp.sum(r, axis=-1, keepdims=True) * inv_n
    var = jnp.maximum(jnp.sum(r * r, axis=-1, keepdims=True) * inv_n - mean * mean, 0.0)
    y = (r - mean) * lax.rsqrt(var + 1e-5)
    out = y * gamma + beta
    # Store only the valid z_dim lanes: output array is un-padded -> writeback shrinks
    # from z_pad*4 to z_dim*4 bytes/row and no post-kernel slice pass is needed.
    o_ref[...] = out[:, :z_dim].astype(o_ref.dtype)


def eeg_project_forward(x, params, *, block_b=1024, bf16_elementwise=None):
    """x: (B, c_num, T) -> (B, z_dim) float32."""
    B = x.shape[0]
    input_dim = int(np.prod(x.shape[1:]))
    x2d = x.reshape(B, input_dim)                           # the .view() glue, plain JAX

    w1, b1, w2, b2, gamma, beta = params
    z_dim = w1.shape[1]
    z_pad = _round_up(max(z_dim, 128), 128)                 # lane-padded internal width
    dz = z_pad - z_dim

    if bf16_elementwise is None:
        bf16_elementwise = _has_bf16_vector_units()

    # Batch tile: large to amortize per-grid-step overhead, multiple of 8 sublanes.
    tb = min(block_b, _round_up(B, 8))
    # v7x megacore: keep >= 2 grid steps so the "parallel" batch axis splits across TCs.
    if B >= 16 and _cdiv(B, tb) < 2:
        tb = _round_up(_cdiv(B, 2), 8)
    grid_b = _cdiv(B, tb)                                   # ragged edge block, no batch pad

    # Zero-pad weights to z_pad lanes (keeps padded lanes of r exactly 0) and cast the
    # MXU operands to bf16 once, outside the kernel.
    w1p = jnp.pad(w1, ((0, 0), (0, dz))).astype(jnp.bfloat16)
    w2p = jnp.pad(w2, ((0, dz), (0, dz))).astype(jnp.bfloat16)
    # Pack bias/affine vectors into a single sublane-padded (8, z_pad) resident constant.
    consts = jnp.zeros((8, z_pad), jnp.float32)
    consts = consts.at[0, :z_dim].set(b1.reshape(-1))
    consts = consts.at[1, :z_dim].set(b2.reshape(-1))
    consts = consts.at[2, :z_dim].set(gamma.reshape(-1))
    consts = consts.at[3, :z_dim].set(beta.reshape(-1))

    # Weights/constants: constant index_map -> VMEM-resident, not re-DMA'd per step.
    const = lambda shape: pl.BlockSpec(shape, lambda i: (0, 0))

    # VMEM budget (v7x has only 64 MiB physical / 32 MiB default scoped); only raise the
    # scoped limit when the tile/weight footprint actually needs it.
    est_vmem = (2 * tb * input_dim * x2d.dtype.itemsize     # x tiles (double-buffered)
                + 2 * tb * z_dim * 4                        # out tiles (double-buffered)
                + 2 * input_dim * z_pad * 2                 # W1 (bf16, resident; headroom)
                + 2 * z_pad * z_pad * 2                     # W2
                + 2 * 8 * z_pad * 4                         # packed b1/b2/gamma/beta
                + 8 * tb * z_pad * 4)                       # in-kernel temporaries headroom
    compiler_kwargs = dict(dimension_semantics=("parallel",))   # megacore-shard batch (v7x)
    if est_vmem > 16 * 1024 * 1024:
        compiler_kwargs["vmem_limit_bytes"] = int(min(est_vmem * 1.5, 100 * 1024 * 1024))

    out = pl.pallas_call(
        functools.partial(eeg_project_kernel, z_dim=z_dim,
                          bf16_elementwise=bf16_elementwise),
        out_shape=jax.ShapeDtypeStruct((B, z_dim), jnp.float32),   # un-padded output
        grid=(grid_b,),
        in_specs=[
            pl.BlockSpec((tb, input_dim), lambda i: (i, 0)),   # x streams over batch
            const((input_dim, z_pad)),                          # W1 (pre-transposed, resident)
            const((z_pad, z_pad)),                              # W2 (pre-transposed, resident)
            const((8, z_pad)),                                  # packed [b1; b2; gamma; beta]
        ],
        out_specs=pl.BlockSpec((tb, z_dim), lambda i: (i, 0)),
        compiler_params=pltpu.CompilerParams(**compiler_kwargs),
    )(x2d, w1p, w2p, consts)
    return out


def init_params(key, input_dim, z_dim):
    """Deterministic parameter init mimicking nn.Linear / nn.LayerNorm shapes.

    PyTorch Linear weight is (out, in); we store the transpose (in, out)."""
    k1, k2, k3, k4 = jax.random.split(key, 4)
    lim1 = 1.0 / np.sqrt(input_dim)
    lim2 = 1.0 / np.sqrt(z_dim)
    w1 = jax.random.uniform(k1, (input_dim, z_dim), jnp.float32, -lim1, lim1)
    b1 = jax.random.uniform(k2, (1, z_dim), jnp.float32, -lim1, lim1)
    w2 = jax.random.uniform(k3, (z_dim, z_dim), jnp.float32, -lim2, lim2)
    b2 = jax.random.uniform(k4, (1, z_dim), jnp.float32, -lim2, lim2)
    gamma = jnp.ones((1, z_dim), jnp.float32)
    beta = jnp.zeros((1, z_dim), jnp.float32)
    return (w1, b1, w2, b2, gamma, beta)


if __name__ == "__main__":
    # Module hyperparams: z_dim=32, c_num=4, timesteps=(0, 16) -> input_dim = 4*16 = 64
    B, c_num, t0, t1, z_dim = 2, 4, 0, 16, 32
    T = t1 - t0
    input_dim = c_num * T

    key = jax.random.PRNGKey(0)
    kx, kp = jax.random.split(key)
    x = jax.random.normal(kx, (B, c_num, T), jnp.float32)
    params = init_params(kp, input_dim, z_dim)

    out = jax.block_until_ready(eeg_project_forward(x, params))
    assert out.shape == (B, z_dim) and out.dtype == jnp.float32

    # Pure-JAX f32 reference matching the PyTorch module (erf GELU, eval-mode dropout).
    w1, b1, w2, b2, gamma, beta = params
    h = x.reshape(B, input_dim) @ w1 + b1
    r = h + (jax.nn.gelu(h, approximate=False) @ w2 + b2)
    mean = r.mean(-1, keepdims=True)
    var = ((r - mean) ** 2).mean(-1, keepdims=True)
    ref = (r - mean) / jnp.sqrt(var + 1e-5) * gamma + beta
    # Looser tolerance: bf16 MXU operands + tanh GELU vs. f32/erf reference.
    np.testing.assert_allclose(np.asarray(out), np.asarray(ref), rtol=3e-2, atol=3e-2)

    print("KERNEL_OK")
</pallas_src>

<mosaic_0001>
module attributes {stable_mosaic.version = 11 : i64} {
  func.func @eeg_project_kernel(%arg0: i32, %arg1: memref<8x64xf32, #tpu.memory_space<vmem>>, %arg2: memref<64x128xbf16, #tpu.memory_space<vmem>>, %arg3: memref<128x128xbf16, #tpu.memory_space<vmem>>, %arg4: memref<8x128xf32, #tpu.memory_space<vmem>>, %arg5: memref<8x32xf32, #tpu.memory_space<vmem>>) attributes {dimension_semantics = [#tpu.dimension_semantics<parallel>], iteration_bounds = array<i64: 1>, scalar_prefetch = 0 : i64, scratch_operands = 0 : i64, tpu.core_type = #tpu.core_type<tc>, window_params = [{transform_indices = @transform_0, window_bounds = array<i64: 8, 64>}, {pipeline_mode = #tpu.pipeline_mode<synchronous>, transform_indices = @transform_1, window_bounds = array<i64: 64, 128>}, {pipeline_mode = #tpu.pipeline_mode<synchronous>, transform_indices = @transform_2, window_bounds = array<i64: 128, 128>}, {pipeline_mode = #tpu.pipeline_mode<synchronous>, transform_indices = @transform_3, window_bounds = array<i64: 8, 128>}, {transform_indices = @transform_4, window_bounds = array<i64: 8, 32>}]} {
    %c0 = arith.constant 0 : index
    %c0_0 = arith.constant 0 : index
    %0 = vector.load %arg4[%c0, %c0_0] : memref<8x128xf32, #tpu.memory_space<vmem>>, vector<8x128xf32>
    %1 = vector.extract_strided_slice %0 {offsets = [0, 0], sizes = [1, 128], strides = [1, 1]} : vector<8x128xf32> to vector<1x128xf32>
    %2 = vector.extract_strided_slice %0 {offsets = [1, 0], sizes = [1, 128], strides = [1, 1]} : vector<8x128xf32> to vector<1x128xf32>
    %3 = vector.extract_strided_slice %0 {offsets = [2, 0], sizes = [1, 128], strides = [1, 1]} : vector<8x128xf32> to vector<1x128xf32>
    %4 = vector.extract_strided_slice %0 {offsets = [3, 0], sizes = [1, 128], strides = [1, 1]} : vector<8x128xf32> to vector<1x128xf32>
    %c0_1 = arith.constant 0 : index
    %c0_2 = arith.constant 0 : index
    %5 = vector.load %arg1[%c0_1, %c0_2] : memref<8x64xf32, #tpu.memory_space<vmem>>, vector<8x64xf32>
    %6 = arith.truncf %5 : vector<8x64xf32> to vector<8x64xbf16>
    %c0_3 = arith.constant 0 : index
    %c0_4 = arith.constant 0 : index
    %7 = vector.load %arg2[%c0_3, %c0_4] : memref<64x128xbf16, #tpu.memory_space<vmem>>, vector<64x128xbf16>
    %cst = arith.constant dense<0.000000e+00> : vector<8x128xf32>
    %8 = tpu.matmul %6, %7, %cst {dimension_numbers = #tpu.dot_dimension_numbers<[1], [0], [0], [1], [0, 0, 1, 1], [], []>} : vector<8x64xbf16>, vector<64x128xbf16>, vector<8x128xf32> -> vector<8x128xf32>
    %9 = vector.broadcast %1 : vector<1x128xf32> to vector<8x128xf32>
    %10 = arith.addf %8, %9 : vector<8x128xf32>
    %11 = arith.mulf %10, %10 : vector<8x128xf32>
    %12 = arith.mulf %10, %11 : vector<8x128xf32>
    %cst_5 = arith.constant 4.471500e-02 : f32
    %13 = vector.broadcast %cst_5 : f32 to vector<8x128xf32>
    %14 = arith.mulf %13, %12 : vector<8x128xf32>
    %15 = arith.addf %10, %14 : vector<8x128xf32>
    %cst_6 = arith.constant 0.797884583 : f32
    %16 = vector.broadcast %cst_6 : f32 to vector<8x128xf32>
    %17 = arith.mulf %16, %15 : vector<8x128xf32>
    %18 = math.tanh %17 : vector<8x128xf32>
    %cst_7 = arith.constant 1.000000e+00 : f32
    %19 = vector.broadcast %cst_7 : f32 to vector<8x128xf32>
    %20 = arith.addf %19, %18 : vector<8x128xf32>
    %cst_8 = arith.constant 5.000000e-01 : f32
    %21 = vector.broadcast %cst_8 : f32 to vector<8x128xf32>
    %22 = arith.mulf %21, %20 : vector<8x128xf32>
    %23 = arith.mulf %10, %22 : vector<8x128xf32>
    %24 = arith.truncf %23 : vector<8x128xf32> to vector<8x128xbf16>
    %c0_9 = arith.constant 0 : index
    %c0_10 = arith.constant 0 : index
    %25 = vector.load %arg3[%c0_9, %c0_10] : memref<128x128xbf16, #tpu.memory_space<vmem>>, vector<128x128xbf16>
    %cst_11 = arith.constant dense<0.000000e+00> : vector<8x128xf32>
    %26 = tpu.matmul %24, %25, %cst_11 {dimension_numbers = #tpu.dot_dimension_numbers<[1], [0], [0], [1], [0, 0, 1, 1], [], []>} : vector<8x128xbf16>, vector<128x128xbf16>, vector<8x128xf32> -> vector<8x128xf32>
    %27 = vector.broadcast %2 : vector<1x128xf32> to vector<8x128xf32>
    %28 = arith.addf %26, %27 : vector<8x128xf32>
    %29 = arith.addf %10, %28 : vector<8x128xf32>
    %cst_12 = arith.constant dense<0.000000e+00> : vector<8xf32>
    %30 = vector.multi_reduction <add>, %29, %cst_12 [1] : vector<8x128xf32> to vector<8xf32>
    %31 = vector.shape_cast %30 : vector<8xf32> to vector<8x1xf32>
    %cst_13 = arith.constant 3.125000e-02 : f32
    %32 = vector.broadcast %cst_13 : f32 to vector<8x1xf32>
    %33 = arith.mulf %31, %32 : vector<8x1xf32>
    %34 = arith.mulf %29, %29 : vector<8x128xf32>
    %cst_14 = arith.constant dense<0.000000e+00> : vector<8xf32>
    %35 = vector.multi_reduction <add>, %34, %cst_14 [1] : vector<8x128xf32> to vector<8xf32>
    %36 = vector.shape_cast %35 : vector<8xf32> to vector<8x1xf32>
    %cst_15 = arith.constant 3.125000e-02 : f32
    %37 = vector.broadcast %cst_15 : f32 to vector<8x1xf32>
    %38 = arith.mulf %36, %37 : vector<8x1xf32>
    %39 = arith.mulf %33, %33 : vector<8x1xf32>
    %40 = arith.subf %38, %39 : vector<8x1xf32>
    %cst_16 = arith.constant 0.000000e+00 : f32
    %41 = vector.broadcast %cst_16 : f32 to vector<8x1xf32>
    %42 = arith.maximumf %40, %41 : vector<8x1xf32>
    %43 = vector.broadcast %33 : vector<8x1xf32> to vector<8x128xf32>
    %44 = arith.subf %29, %43 : vector<8x128xf32>
    %cst_17 = arith.constant 9.99999974E-6 : f32
    %45 = vector.broadcast %cst_17 : f32 to vector<8x1xf32>
    %46 = arith.addf %42, %45 : vector<8x1xf32>
    %47 = math.rsqrt %46 : vector<8x1xf32>
    %48 = vector.broadcast %47 : vector<8x1xf32> to vector<8x128xf32>
    %49 = arith.mulf %44, %48 : vector<8x128xf32>
    %50 = vector.broadcast %3 : vector<1x128xf32> to vector<8x128xf32>
    %51 = arith.mulf %49, %50 : vector<8x128xf32>
    %52 = vector.broadcast %4 : vector<1x128xf32> to vector<8x128xf32>
    %53 = arith.addf %51, %52 : vector<8x128xf32>
    %54 = vector.extract_strided_slice %53 {offsets = [0, 0], sizes = [8, 32], strides = [1, 1]} : vector<8x128xf32> to vector<8x32xf32>
    %c0_18 = arith.constant 0 : index
    %c0_19 = arith.constant 0 : index
    %55 = vector.load %arg5[%c0_18, %c0_19] : memref<8x32xf32, #tpu.memory_space<vmem>>, vector<8x32xf32>
    tpu.vector_store %arg5[%c0_18, %c0_19], %54 {strides = array<i32>} : memref<8x32xf32, #tpu.memory_space<vmem>>, vector<8x32xf32>,
    return
  }
  func.func @transform_0(%arg0: i32) -> (i32, i32) {
    %c0_i32 = arith.constant 0 : i32
    %c0_i32_0 = arith.constant 0 : i32
    return %arg0, %c0_i32 : i32, i32
  }
  func.func @transform_1(%arg0: i32) -> (i32, i32) {
    %c0_i32 = arith.constant 0 : i32
    %c0_i32_0 = arith.constant 0 : i32
    %c0_i32_1 = arith.constant 0 : i32
    return %c0_i32, %c0_i32_0 : i32, i32
  }
  func.func @transform_2(%arg0: i32) -> (i32, i32) {
    %c0_i32 = arith.constant 0 : i32
    %c0_i32_0 = arith.constant 0 : i32
    %c0_i32_1 = arith.constant 0 : i32
    return %c0_i32, %c0_i32_0 : i32, i32
  }
  func.func @transform_3(%arg0: i32) -> (i32, i32) {
    %c0_i32 = arith.constant 0 : i32
    %c0_i32_0 = arith.constant 0 : i32
    %c0_i32_1 = arith.constant 0 : i32
    return %c0_i32, %c0_i32_0 : i32, i32
  }
  func.func @transform_4(%arg0: i32) -> (i32, i32) {
    %c0_i32 = arith.constant 0 : i32
    %c0_i32_0 = arith.constant 0 : i32
    return %arg0, %c0_i32 : i32, i32
  }
}

</mosaic_0001>

<bundles_post_ra>
// kernel: tpu_custom_call.1
= control target key start
LH: loop header
LB: loop body
LE: loop exit
PB: predicated region body
PF: predicated region fallthrough
CT: control target
= control target key end

     0   :  { %9 = vsyncpa [#allocation3], 0  ;;  %s583_s0 = inlined_call_operand.hbm [shape: f32[2,64], index: 0, kind: input, shape index: {}]   ;;  %s584_s1 = inlined_call_operand.hbm [shape: bf16[64,128], index: 1, kind: input, shape index: {}]   ;;  %s585_s2 = inlined_call_operand.hbm [shape: bf16[128,128], index: 2, kind: input, shape index: {}]   ;;  %s586_s3 = inlined_call_operand.vmem [shape: f32[8,128], index: 3, kind: input, shape index: {}]   ;;  %s587_s4 = inlined_call_operand.hbm [shape: f32[2,32], index: 4, kind: output, shape index: {}]  }
   0x1   :  { %10 = vsyncpa [#allocation6], 0 }
   0x2   :  { %11 = vsyncpa [#allocation4], 0 }
   0x3   :  { %16 = vsyncadd [#allocation3], 96  ;;  %s485_s15 = smov [#allocation5]   ;;  %s391_s19 = scalar_lea.hbm %s584_s1, 512 }
   0x4   :  { %s29_s16 = sshll.u32 %s485_s15, 4  ;;  %p392_p0 = scmp.ne.s32.totalorder %s584_s1, %s391_s19  ;;  %s30_s16 = int_to_ptr.vmem [resolvable:$true] %s29_s16 }
   0x5   :  { %p395_p1 = scmp.lt.u32.totalorder %s391_s19, %s584_s1 }
   0x7   :  { %p397_p2 = pnand %p395_p1, %p392_p0 }
   0x9   :  { %400 = shalt.err (!%p397_p2)
}
   0xa   :  { %s401_s24 = scalar_lea.vmem %s30_s16, 512  ;;  %p406_p4 = scmp.lt.s32.totalorder %s30_s16, %s30_s16 }
   0xb   :  { %p402_p3 = scmp.ne.s32.totalorder %s30_s16, %s401_s24  ;;  %p407_p5 = scmp.lt.s32.totalorder %s401_s24, %s401_s24 }
   0xd   :  { %p408_p6 = por %p407_p5, %p406_p4 }
   0xf   :  { %p409_p7 = pnand %p408_p6, %p402_p3 }
  0x11   :  { %412 = shalt.err (!%p409_p7)
}
  0x12   :  { %s486_s25 = smov 64   ;;  %s487_s26 = smov 4  }
  0x13   :  { %35 = dma.hbm_to_vmem [thread:$0]  %s584_s1, 512, %s30_s16, [#allocation6], %s486_s25, %s486_s25, %s487_s26  }
  0x14   :  { %s488_s29 = smov [#allocation2]   ;;  %s413_s7 = scalar_lea.hbm %s583_s0, 32 }
  0x15   :  { %s17_s30 = sshll.u32 %s488_s29, 4  ;;  %p414_p8 = scmp.ne.s32.totalorder %s583_s0, %s413_s7  ;;  %s18_s30 = int_to_ptr.vmem [resolvable:$true] %s17_s30 }
  0x16   :  { %p417_p9 = scmp.lt.u32.totalorder %s413_s7, %s583_s0 }
  0x18   :  { %p419_p10 = pnand %p417_p9, %p414_p8 }
  0x1a   :  { %422 = shalt.err (!%p419_p10)
}
  0x1b   :  { %s423_s12 = scalar_lea.vmem %s18_s30, 32  ;;  %s427_s1 = scalar_lea.vmem %s18_s30, 128 }
  0x1c   :  { %p424_p11 = scmp.ne.s32.totalorder %s18_s30, %s423_s12  ;;  %p428_p12 = scmp.lt.s32.totalorder %s18_s30, %s18_s30 }
  0x1d   :  { %p429_p13 = scmp.lt.s32.totalorder %s427_s1, %s423_s12 }
  0x1f   :  { %p430_p0 = por %p429_p13, %p428_p12 }
  0x21   :  { %p431_p1 = pnand %p430_p0, %p424_p11 }
  0x23   :  { %434 = shalt.err (!%p431_p1)
}
  0x24   :  { %s489_s13 = smov 32   ;;  %s490_s14 = smov 2  }
  0x25   :  { %23 = dma.hbm_to_vmem [thread:$0]  %s583_s0, 32, %s18_s30, [#allocation3], %s489_s13, %s489_s13, %s490_s14  }
  0x26   :  { %s491_s17 = smov [#allocation7]   ;;  %s435_s21 = scalar_lea.hbm %s585_s2, 1024 }
  0x27   :  { %s41_s18 = sshll.u32 %s491_s17, 4  ;;  %p436_p2 = scmp.ne.s32.totalorder %s585_s2, %s435_s21  ;;  %s42_s18 = int_to_ptr.vmem [resolvable:$true] %s41_s18 }
  0x28   :  { %p439_p3 = scmp.lt.u32.totalorder %s435_s21, %s585_s2 }
  0x2a   :  { %p441_p4 = pnand %p439_p3, %p436_p2 }
  0x2c   :  { %444 = shalt.err (!%p441_p4)
}
  0x2d   :  { %s445_s28 = scalar_lea.vmem %s42_s18, 1024  ;;  %p450_p6 = scmp.lt.s32.totalorder %s42_s18, %s42_s18 }
  0x2e   :  { %p446_p5 = scmp.ne.s32.totalorder %s42_s18, %s445_s28  ;;  %p451_p7 = scmp.lt.s32.totalorder %s445_s28, %s445_s28 }
  0x30   :  { %p452_p8 = por %p451_p7, %p450_p6 }
  0x32   :  { %p453_p9 = pnand %p452_p8, %p446_p5 }
  0x34   :  { %456 = shalt.err (!%p453_p9)
}
  0x35   :  { %47 = dma.hbm_to_vmem [thread:$0]  %s585_s2, 1024, %s42_s18, [#allocation6], %s486_s25, %s486_s25, %s487_s26  }
  0x36   :  { %479 = dma.done.wait [#allocation3], 128  }
  0x37   :  { %480 = vsyncadd [#allocation3], 4294967168 }
  0x38   :  { %481 = dma.done.wait [#allocation6], 1536  }
  0x39   :  { %482 = vsyncadd [#allocation6], 4294965760  ;;  %v492_v0 = vmov 0.0   ;;  %vm493_vm0 = vmmov 0   ;;  %v375_v1 = vld [vmem:[#allocation5] sm:$0xff]   ;;  %v376_v2 = vld [vmem:[#allocation5 + $0x8] sm:$0xff]   ;;  %v71_v15 = vlaneseq }
  0x3a   :  { %333 = vmatprep.subr.bf16.mxu0 %v492_v0  ;;  %341 = vmatprep.mubr.msk.bf16.mxu0 %vm493_vm0, %v492_v0  ;;  %v377_v3 = vld [vmem:[#allocation5 + $0x10] sm:$0xff]   ;;  %v378_v4 = vld [vmem:[#allocation5 + $0x18] sm:$0xff]   ;;  %vm99_vm1 = vcmask 523264   ;;  %v379_v7 = vld [vmem:[#allocation7] sm:$0xff]   ;;  %vm286_vm2 = vcmask 261120  }
  0x3b   :  { %345 = vmatprep.subr.bf16.mxu1 %v492_v0  ;;  %361 = vmatprep.mubr.msk.bf16.mxu1 %vm493_vm0, %v492_v0  ;;  %v61_v5 = vld [vmem:[#allocation2] sm:$0xff]  ;;  %v380_v8 = vld [vmem:[#allocation7 + $0x8] sm:$0xff]   ;;  %v381_v9 = vld [vmem:[#allocation7 + $0x10] sm:$0xff]   ;;  %v72_v16 = vshrl.u32 %v71_v15, 7 }
  0x3c   :  { %334 = vmatpush3.bf16.msra.mxu0 %v375_v1  ;;  %v62_v6 = vpack.c.bf16 %v61_v5, %v61_v5  ;;  %346 = vmatpush3.bf16.msra.mxu1 %v379_v7  ;;  %v382_v10 = vld [vmem:[#allocation7 + $0x18] sm:$0xff]   ;;  %v383_v11 = vld [vmem:[#allocation7 + $0x20] sm:$0xff]   ;;  %v384_v12 = vld [vmem:[#allocation7 + $0x28] sm:$0xff]  }
  0x3d   :  { %335 = vmatprep.subr.bf16.mxu0 %v492_v0  ;;  %347 = vmatprep.subr.bf16.mxu1 %v492_v0  ;;  %v385_v13 = vld [vmem:[#allocation7 + $0x30] sm:$0xff]   ;;  %v386_v14 = vld [vmem:[#allocation7 + $0x38] sm:$0xff]   ;;  %v73_v17 = vsub.s32 0, %v72_v16  ;;  %v171_v35 = vsub.s32 1, %v72_v16  ;;  %v278_v52 = vsub.s32 2, %v72_v16  ;;  %v283_v53 = vsub.s32 3, %v72_v16 }
  0x3e   :  { %v60_v18 = vld [vmem:[%s586_s3] sm:$0xff] }
  0x3f   :  { %v74_v19 = vrot.slane %v60_v18, %v73_v17  ;;  %v172_v36 = vrot.slane %v60_v18, %v171_v35  ;;  %v279_v54 = vrot.slane %v60_v18, %v278_v52  ;;  %v284_v57 = vrot.slane %v60_v18, %v283_v53 }
  0x40   :  { %336 = vmatpush3.bf16.msra.mxu0 %v376_v2  ;;  %348 = vmatpush3.bf16.msra.mxu1 %v380_v8 }
  0x41   :  { %337 = vmatprep.subr.bf16.mxu0 %v492_v0  ;;  %349 = vmatprep.subr.bf16.mxu1 %v492_v0 }
  0x44   :  { %338 = vmatpush3.bf16.msra.mxu0 %v377_v3  ;;  %350 = vmatpush3.bf16.msra.mxu1 %v381_v9 }
  0x45   :  { %339 = vmatprep.subr.bf16.mxu0 %v492_v0  ;;  %351 = vmatprep.subr.bf16.mxu1 %v492_v0 }
  0x48   :  { %340 = vmatpush3.bf16.msra.mxu0 %v378_v4  ;;  %352 = vmatpush3.bf16.msra.mxu1 %v382_v10 }
  0x49   :  { %353 = vmatprep.subr.bf16.mxu1 %v492_v0 }
  0x4b   :  { %342 = vmatmul.mubr.msk.bf16.vlgmr.msra.gmra.mrb[0].mxu0 %vm99_vm1, %v62_v6 }
  0x4c   :  { %354 = vmatpush3.bf16.msra.mxu1 %v383_v11 }
  0x4d   :  { %355 = vmatprep.subr.bf16.mxu1 %v492_v0 }
  0x50   :  { %356 = vmatpush3.bf16.msra.mxu1 %v384_v12 }
  0x51   :  { %357 = vmatprep.subr.bf16.mxu1 %v492_v0 }
  0x54   :  { %358 = vmatpush3.bf16.msra.mxu1 %v385_v13 }
  0x55   :  { %359 = vmatprep.subr.bf16.mxu1 %v492_v0 }
  0x58   :  { %360 = vmatpush3.bf16.msra.mxu1 %v386_v14 }
 0x11e   :  { %v137_v20 = vpop.f32.mrb[0].mxu0 }
 0x11f   :  { %v138_v21 = vadd.f32 %v137_v20, %v74_v19  ;;  %v343_v22 = vpop.f32.mrb[1].mxu0 }
 0x120   :  { %v140_v23 = vpop.f32.mrb[2].mxu0 }
 0x121   :  { %v143_v24 = vmul.f32 %v138_v21, %v138_v21  ;;  %v344_v25 = vpop.f32.mrb[3].mxu0 }
 0x123   :  { %v144_v26 = vmul.f32 %v143_v24, %v138_v21 }
 0x125   :  { %v145_v27 = vmul.f32 0.044715, %v144_v26 }
 0x127   :  { %v146_v28 = vadd.f32 %v145_v27, %v138_v21 }
 0x129   :  { %v147_v29 = vmul.f32 0.7978846, %v146_v28 }
 0x12b   :  { %387 = vtanh.f32 %v147_v29 }
 0x135   :  { %v388_v30 = vpop.eup %387 }
 0x136   :  { %v149_v31 = vadd.f32 1.0, %v388_v30 }
 0x138   :  { %v150_v32 = vmul.f32 0.5, %v149_v31 }
 0x13a   :  { %v151_v33 = vmul.f32 %v150_v32, %v138_v21 }
 0x13c   :  { %v152_v34 = vpack.c.bf16 %v151_v33, %v151_v33 }
 0x13e   :  { %362 = vmatmul.mubr.bf16.vlgmr.msra.gmra.mrb[0].mxu1 %v152_v34 }
 0x211   :  { %v255_v37 = vpop.f32.mrb[0].mxu1 }
 0x212   :  { %v256_v38 = vadd.f32 %v255_v37, %v172_v36  ;;  %v363_v39 = vpop.f32.mrb[1].mxu1 }
 0x213   :  { %v258_v40 = vpop.f32.mrb[2].mxu1 }
 0x214   :  { %v261_v41 = vadd.f32 %v256_v38, %v138_v21  ;;  %v364_v42 = vpop.f32.mrb[3].mxu1 }
 0x216   :  { %262 = vadd.xlane.f32.xlu0 %v261_v41  ;;  %v265_v43 = vmul.f32 %v261_v41, %v261_v41 }
 0x21a   :  { %266 = vadd.xlane.f32.xlu0 %v265_v43 }
 0x2a3   :  { %v263_v44 = vpop.xlane.xlu0 %262 }
 0x2a4   :  { %v264_v45 = vmul.f32 0.03125, %v263_v44 }
 0x2a6   :  { %v269_v47 = vmul.f32 %v264_v45, %v264_v45  ;;  %v272_v55 = vsub.f32 %v261_v41, %v264_v45 }
 0x2a7   :  { %v267_v46 = vpop.xlane.xlu0 %266 }
 0x2a8   :  { %v268_v48 = vmul.f32 0.03125, %v267_v46 }
 0x2aa   :  { %v270_v49 = vsub.f32 %v268_v48, %v269_v47 }
 0x2ac   :  { %v271_v50 = vmax.f32 %v270_v49, 0.0 }
 0x2ae   :  { %v273_v51 = vadd.f32 1e-05, %v271_v50 }
 0x2b0   :  { %389 = vrsqrt.f32 %v273_v51 }
 0x2ba   :  { %v390_v56 = vpop.eup %389 }
 0x2bb   :  { %v275_v58 = vmul.f32 %v390_v56, %v272_v55 }
 0x2bd   :  { %v280_v59 = vmul.f32 %v279_v54, %v275_v58 }
 0x2bf   :  { %v285_v60 = vadd.f32 %v284_v57, %v280_v59 }
 0x2c1   :  { %287 = vst.msk [vmem:[#allocation8] sm:$0xff] %vm286_vm2, %v285_v60 }
 0x2c2   :  { %292 = vsyncadd [#allocation4], 96  ;;  %s494_s3 = smov [#allocation8]  }
 0x2c3   :  { %s293_s26 = sshll.u32 %s494_s3, 4  ;;  %s294_s26 = int_to_ptr.vmem [resolvable:$true] %s293_s26 }
 0x2c4   :  { %s457_s30 = scalar_lea.vmem %s294_s26, 32  ;;  %s461_s5 = scalar_lea.vmem %s294_s26, 128 }
 0x2c5   :  { %p458_p10 = scmp.ne.s32.totalorder %s294_s26, %s457_s30  ;;  %p462_p11 = scmp.lt.s32.totalorder %s294_s26, %s294_s26 }
 0x2c6   :  { %p463_p12 = scmp.lt.s32.totalorder %s461_s5, %s457_s30 }
 0x2c8   :  { %p464_p13 = por %p463_p12, %p462_p11 }
 0x2ca   :  { %p465_p0 = pnand %p464_p13, %p458_p10 }
 0x2cc   :  { %468 = shalt.err (!%p465_p0)
}
 0x2cd   :  { %s469_s8 = scalar_lea.hbm %s587_s4, 32 }
 0x2ce   :  { %p470_p1 = scmp.ne.s32.totalorder %s587_s4, %s469_s8  ;;  %p473_p2 = scmp.lt.u32.totalorder %s469_s8, %s587_s4 }
 0x2d0   :  { %p475_p3 = pnand %p473_p2, %p470_p1 }
 0x2d2   :  { %478 = shalt.err (!%p475_p3)
}
 0x2d3   :  { %299 = dma.vmem_to_hbm [thread:$0]  %s294_s26, 32, %s587_s4, [#allocation4], %s489_s13, %s489_s13, %s490_s14  }
 0x2d4   :  { %483 = dma.done.wait [#allocation4], 128  }
 0x2d5   :  { %484 = vsyncadd [#allocation4], 4294967168 }
 0x2d6   :  { %303 = vsyncpa [#allocation3], 1 }
 0x2d7   :  { %304 = vsyncpa [#allocation6], 1 }
 0x2d8   :  { %305 = vsyncpa [#allocation4], 1 }

</bundles_post_ra>
